<compile_context>
chip_gen: v7x
topology: tpu7x:2x2x1
jax: 0.10.0
libtpu: 0.0.40
codegen_flags: <defaults>
</compile_context>

<pallas_src>
import functools

import jax
import jax.numpy as jnp
from jax import lax
from jax.experimental import pallas as pl
from jax.experimental.pallas import tpu as pltpu

_MIB = 1024 * 1024


def _round_up(x, m):
    return ((x + m - 1) // m) * m


def _vmem_budget_bytes():
    """Per-TensorCore VMEM capacity minus headroom (v7x ~56 MiB, v5e/v6e ~120 MiB)."""
    try:
        cap = int(pltpu.get_tpu_info().vmem_capacity_bytes)
    except Exception:
        cap = 64 * _MIB  # conservative fallback = smallest generation (v7x)
    return max(cap - 8 * _MIB, 16 * _MIB)


def _tile_vmem_estimate(tile, dim, in_itemsize):
    """Rough per-grid-step VMEM footprint for a square (tile, tile) logits block."""
    img_in = 2 * tile * dim * in_itemsize      # image tile (double buffered)
    txt_in = 2 * tile * dim * in_itemsize      # text tile (double buffered)
    imgn = tile * dim * 2                      # bf16 normalized image scratch
    logits = 4 * tile * tile * 4               # logits + exp / mask temporaries
    outs = 2 * 2 * tile * 4 + 1024             # per-column partial LSE output blocks
    state = 2 * tile * 4 + 64                  # online row-LSE state + diag acc
    return img_in + txt_in + imgn + logits + outs + state


def _choose_tile(batch, dim, in_itemsize, budget):
    if batch <= 128:
        return batch                           # single tile, no padding / masking cost
    # Multiples of 128 keep logits lane-dense and reductions unmasked; pick the
    # largest tile the per-generation VMEM budget allows (v5e tends to land on
    # 256 or smaller because of its tighter store/temporary pressure).
    for cand in (512, 256, 128):
        if cand <= _round_up(batch, 128) and _tile_vmem_estimate(cand, dim, in_itemsize) <= budget:
            return cand
    return 128


def _contrastive_tile_kernel(
    img_ref, txt_ref,                          # inputs  : (T, D) each
    colpart_ref, rowpart_ref,                  # outputs : (1, 1, T), (1, 1, 1)
    imgn_ref, m_r_ref, l_r_ref, diag_ref,      # scratch
    *, inv_temp, batch, tile,
):
    i = pl.program_id(0)                       # image (row) tile
    j = pl.program_id(1)                       # text (column) tile
    last_j = pl.num_programs(1) - 1

    # ---- per-row-block init (first column tile): normalize the image tile once,
    # fold 1/temp into it, keep only a bf16 copy; reset the online row-LSE state.
    @pl.when(j == 0)
    def _init():
        img = img_ref[...].astype(jnp.float32)                       # (T, D)
        sq = jnp.sum(img * img, axis=1, keepdims=True)
        inv_norm = lax.rsqrt(jnp.maximum(sq, 1e-24))  # == 1 / max(||x||, 1e-12)
        imgn_ref[...] = (img * (inv_norm * inv_temp)).astype(jnp.bfloat16)
        m_r_ref[...] = jnp.full(m_r_ref.shape, -jnp.inf, jnp.float32)
        l_r_ref[...] = jnp.zeros(l_r_ref.shape, jnp.float32)
        diag_ref[...] = jnp.zeros(diag_ref.shape, jnp.float32)

    # ---- normalize this text tile (each (i, j) tile is visited exactly once).
    txt = txt_ref[...].astype(jnp.float32)                            # (T, D)
    tsq = jnp.sum(txt * txt, axis=1, keepdims=True)
    txt_n = (txt * lax.rsqrt(jnp.maximum(tsq, 1e-24))).astype(jnp.bfloat16)

    # ---- (T, T) scaled logits on the MXU: bf16 operands, f32 accumulation,
    # contracting dim 1 with dim 1 (no explicit transpose of the text operand).
    logits = lax.dot_general(
        imgn_ref[...], txt_n,
        dimension_numbers=(((1,), (1,)), ((), ())),
        preferred_element_type=jnp.float32,
    )

    # ---- validity masks for padded rows / columns (batch padded to a tile multiple).
    rows_left = batch - i * tile
    cols_left = batch - j * tile
    row_valid = lax.broadcasted_iota(jnp.int32, (tile, 1), 0) < rows_left   # (T, 1)
    col_valid = lax.broadcasted_iota(jnp.int32, (1, tile), 1) < cols_left   # (1, T)
    neg_inf = jnp.float32(-jnp.inf)

    # ---- text->image direction: per-column partial logsumexp over THIS row block
    # (complete within the tile); merged exactly across row blocks afterwards.
    lcol = jnp.where(row_valid, logits, neg_inf)
    colm = jnp.max(lcol, axis=0, keepdims=True)                            # (1, T)
    cole = jnp.sum(jnp.where(row_valid, jnp.exp(logits - colm), 0.0),
                   axis=0, keepdims=True)                                  # (1, T), >= 1
    colpart_ref[...] = (colm + jnp.log(cole)).reshape(1, 1, tile)

    # ---- image->text direction: online (flash-style) row logsumexp across column tiles.
    lrow = jnp.where(col_valid, logits, neg_inf)
    m_prev = m_r_ref[...]                                                  # (T, 1)
    m_new = jnp.maximum(m_prev, jnp.max(lrow, axis=1, keepdims=True))
    p = jnp.where(col_valid, jnp.exp(logits - m_new), 0.0)
    l_r_ref[...] = l_r_ref[...] * jnp.exp(m_prev - m_new) + jnp.sum(
        p, axis=1, keepdims=True)
    m_r_ref[...] = m_new

    # ---- diagonal: with square tiles, global row == global col only in the
    # i == j tile.  Pull it straight out of the logits block (exact w.r.t. LSE).
    @pl.when(i == j)
    def _diag():
        rr = lax.broadcasted_iota(jnp.int32, (tile, tile), 0)
        cc = lax.broadcasted_iota(jnp.int32, (tile, tile), 1)
        on_diag = (rr == cc) & (rr < rows_left)
        diag_ref[...] = jnp.sum(jnp.where(on_diag, logits, 0.0), keepdims=True)

    # ---- per-row-block finalize (last column tile): emit the scalar partial
    #     sum_r lse_r  -  2 * sum_r logits[r, r]     (valid rows only).
    @pl.when(j == last_j)
    def _finalize():
        lse_r = m_r_ref[...] + jnp.log(l_r_ref[...])                       # (T, 1)
        row_sum = jnp.sum(jnp.where(row_valid, lse_r, 0.0), keepdims=True)  # (1, 1)
        rowpart_ref[...] = (row_sum - 2.0 * diag_ref[...]).reshape(1, 1, 1)


def _merge_kernel(colpart_ref, rowpart_ref, out_ref, *, batch):
    """Exact merge of per-row-block partials -> scalar loss."""
    cp = colpart_ref[...]                                 # (num_tiles, 1, B_pad)
    m = jnp.max(cp, axis=0)                               # (1, B_pad)
    lse_c = m + jnp.log(jnp.sum(jnp.exp(cp - m), axis=0))  # exact column LSE
    col_valid = lax.broadcasted_iota(jnp.int32, lse_c.shape, 1) < batch
    col_total = jnp.sum(jnp.where(col_valid, lse_c, 0.0),
                        axis=1, keepdims=True)            # (1, 1)
    row_total = jnp.sum(rowpart_ref[...], axis=0)         # (1, 1)  (already has -2*diag)
    out_ref[...] = (row_total + col_total) * (0.5 / batch)


def contrastive_loss(image_encoding, text_encoding, temp=0.01):
    """Pallas TPU implementation of ContrastiveLoss.forward."""
    assert image_encoding.shape == text_encoding.shape
    assert image_encoding.ndim == 2
    batch, dim = image_encoding.shape
    itemsize = jnp.dtype(image_encoding.dtype).itemsize

    budget = _vmem_budget_bytes()
    tile = _choose_tile(batch, dim, itemsize, budget)
    b_pad = _round_up(batch, tile)
    num_t = b_pad // tile
    if b_pad != batch:
        pad = ((0, b_pad - batch), (0, 0))
        image_encoding = jnp.pad(image_encoding, pad)
        text_encoding = jnp.pad(text_encoding, pad)

    vmem_limit = int(min(budget,
                         max(32 * _MIB, 2 * _tile_vmem_estimate(tile, dim, itemsize))))

    kernel = functools.partial(
        _contrastive_tile_kernel,
        inv_temp=1.0 / float(temp), batch=batch, tile=tile)

    colpart, rowpart = pl.pallas_call(
        kernel,
        out_shape=(
            jax.ShapeDtypeStruct((num_t, 1, b_pad), jnp.float32),  # per-block column LSE
            jax.ShapeDtypeStruct((num_t, 1, 1), jnp.float32),      # per-block row partial
        ),
        grid=(num_t, num_t),
        in_specs=[
            pl.BlockSpec((tile, dim), lambda i, j: (i, 0)),        # image row tile
            pl.BlockSpec((tile, dim), lambda i, j: (j, 0)),        # text column tile
        ],
        out_specs=(
            pl.BlockSpec((1, 1, tile), lambda i, j: (i, 0, j)),
            pl.BlockSpec((1, 1, 1), lambda i, j: (i, 0, 0)),
        ),
        scratch_shapes=[
            pltpu.VMEM((tile, dim), jnp.bfloat16),  # normalized, 1/temp-scaled image tile
            pltpu.VMEM((tile, 1), jnp.float32),     # online row max
            pltpu.VMEM((tile, 1), jnp.float32),     # online row sum(exp)
            pltpu.VMEM((1, 1), jnp.float32),        # diagonal partial sum
        ],
        compiler_params=pltpu.CompilerParams(
            # Row-tile axis is fully independent -> megacore splits it on v7x;
            # column-tile axis carries the online row-LSE -> "arbitrary".
            dimension_semantics=("parallel", "arbitrary"),
            vmem_limit_bytes=vmem_limit,
        ),
    )(image_encoding, text_encoding)

    merge_limit = int(min(budget, max(32 * _MIB, 8 * num_t * b_pad * 4)))
    loss = pl.pallas_call(
        functools.partial(_merge_kernel, batch=batch),
        out_shape=jax.ShapeDtypeStruct((1, 1), jnp.float32),
        compiler_params=pltpu.CompilerParams(vmem_limit_bytes=merge_limit),
    )(colpart, rowpart)
    return loss[0, 0]


def _reference_loss(image_encoding, text_encoding, temp=0.01):
    """Pure-JAX reference (mirrors the PyTorch forward) for sanity checking."""
    img = image_encoding.astype(jnp.float32)
    txt = text_encoding.astype(jnp.float32)
    img_n = img / jnp.maximum(jnp.linalg.norm(img, axis=1, keepdims=True), 1e-12)
    txt_n = txt / jnp.maximum(jnp.linalg.norm(txt, axis=1, keepdims=True), 1e-12)
    logits = img_n @ txt_n.T / temp
    labels = jnp.arange(logits.shape[0])

    def ce(lg):
        lse = jax.scipy.special.logsumexp(lg, axis=1)
        return jnp.mean(lse - lg[jnp.arange(lg.shape[0]), labels])

    return (ce(logits) + ce(logits.T)) / 2.0


if __name__ == "__main__":
    # Small shapes consistent with the module: batch=8, hidden=32.
    B, D = 8, 32
    key = jax.random.PRNGKey(0)
    k_img, k_txt = jax.random.split(key)
    image_encoding = jax.random.normal(k_img, (B, D), dtype=jnp.float32)
    text_encoding = jax.random.normal(k_txt, (B, D), dtype=jnp.float32)

    loss = contrastive_loss(image_encoding, text_encoding, temp=0.01)
    loss = jax.block_until_ready(loss)

    ref = jax.block_until_ready(_reference_loss(image_encoding, text_encoding, temp=0.01))
    # bf16 MXU operands (f32 accumulation) + the 1/temp = 100 amplification of the
    # logits -> compare with a correspondingly looser tolerance.
    assert jnp.allclose(loss, ref, rtol=2e-2, atol=2e-2), (loss, ref)

    print("KERNEL_OK")
</pallas_src>

<mosaic_0001>
module attributes {stable_mosaic.version = 11 : i64} {
  func.func @_contrastive_tile_kernel(%arg0: i32, %arg1: i32, %arg2: memref<8x32xf32, #tpu.memory_space<vmem>>, %arg3: memref<8x32xf32, #tpu.memory_space<vmem>>, %arg4: memref<1x1x8xf32, #tpu.memory_space<vmem>>, %arg5: memref<1x1x1xf32, #tpu.memory_space<vmem>>, %arg6: memref<8x32xbf16, #tpu.memory_space<vmem>>, %arg7: memref<8x1xf32, #tpu.memory_space<vmem>>, %arg8: memref<8x1xf32, #tpu.memory_space<vmem>>, %arg9: memref<1x1xf32, #tpu.memory_space<vmem>>) attributes {dimension_semantics = [#tpu.dimension_semantics<parallel>, #tpu.dimension_semantics<arbitrary>], iteration_bounds = array<i64: 1, 1>, scalar_prefetch = 0 : i64, scratch_operands = 4 : i64, tpu.core_type = #tpu.core_type<tc>, window_params = [{transform_indices = @transform_0, window_bounds = array<i64: 8, 32>}, {transform_indices = @transform_1, window_bounds = array<i64: 8, 32>}, {transform_indices = @transform_2, window_bounds = array<i64: 1, 1, 8>}, {transform_indices = @transform_3, window_bounds = array<i64: 1, 1, 1>}]} {
    %c0_i32 = arith.constant 0 : i32
    %0 = arith.cmpi eq, %arg1, %c0_i32 : i32
    %1 = arith.extui %0 : i1 to i32
    %c0_i32_0 = arith.constant 0 : i32
    %2 = arith.cmpi ne, %1, %c0_i32_0 : i32
    scf.if %2 {
      %c0_31 = arith.constant 0 : index
      %c0_32 = arith.constant 0 : index
      %74 = vector.load %arg2[%c0_31, %c0_32] : memref<8x32xf32, #tpu.memory_space<vmem>>, vector<8x32xf32>
      %75 = arith.mulf %74, %74 : vector<8x32xf32>
      %cst_33 = arith.constant dense<0.000000e+00> : vector<8xf32>
      %76 = vector.multi_reduction <add>, %75, %cst_33 [1] : vector<8x32xf32> to vector<8xf32>
      %77 = vector.shape_cast %76 : vector<8xf32> to vector<8x1xf32>
      %cst_34 = arith.constant 1.000000e-24 : f32
      %78 = vector.broadcast %cst_34 : f32 to vector<8x1xf32>
      %79 = arith.maximumf %77, %78 : vector<8x1xf32>
      %80 = math.rsqrt %79 : vector<8x1xf32>
      %cst_35 = arith.constant 1.000000e+02 : f32
      %81 = vector.broadcast %cst_35 : f32 to vector<8x1xf32>
      %82 = arith.mulf %80, %81 : vector<8x1xf32>
      %83 = vector.broadcast %82 : vector<8x1xf32> to vector<8x32xf32>
      %84 = arith.mulf %74, %83 : vector<8x32xf32>
      %85 = arith.truncf %84 : vector<8x32xf32> to vector<8x32xbf16>
      %c0_36 = arith.constant 0 : index
      %c0_37 = arith.constant 0 : index
      %86 = vector.load %arg6[%c0_36, %c0_37] : memref<8x32xbf16, #tpu.memory_space<vmem>>, vector<8x32xbf16>
      tpu.vector_store %arg6[%c0_36, %c0_37], %85 {strides = array<i32>} : memref<8x32xbf16, #tpu.memory_space<vmem>>, vector<8x32xbf16>,
      %cst_38 = arith.constant 0xFF800000 : f32
      %87 = vector.broadcast %cst_38 : f32 to vector<8x1xf32>
      %c0_39 = arith.constant 0 : index
      %c0_40 = arith.constant 0 : index
      %88 = vector.load %arg7[%c0_39, %c0_40] : memref<8x1xf32, #tpu.memory_space<vmem>>, vector<8x1xf32>
      tpu.vector_store %arg7[%c0_39, %c0_40], %87 {strides = array<i32>} : memref<8x1xf32, #tpu.memory_space<vmem>>, vector<8x1xf32>,
      %cst_41 = arith.constant 0.000000e+00 : f32
      %89 = vector.broadcast %cst_41 : f32 to vector<8x1xf32>
      %c0_42 = arith.constant 0 : index
      %c0_43 = arith.constant 0 : index
      %90 = vector.load %arg8[%c0_42, %c0_43] : memref<8x1xf32, #tpu.memory_space<vmem>>, vector<8x1xf32>
      tpu.vector_store %arg8[%c0_42, %c0_43], %89 {strides = array<i32>} : memref<8x1xf32, #tpu.memory_space<vmem>>, vector<8x1xf32>,
      %cst_44 = arith.constant 0.000000e+00 : f32
      %91 = vector.broadcast %cst_44 : f32 to vector<1x1xf32>
      %c0_45 = arith.constant 0 : index
      %c0_46 = arith.constant 0 : index
      %92 = vector.load %arg9[%c0_45, %c0_46] : memref<1x1xf32, #tpu.memory_space<vmem>>, vector<1x1xf32>
      tpu.vector_store %arg9[%c0_45, %c0_46], %91 {strides = array<i32>} : memref<1x1xf32, #tpu.memory_space<vmem>>, vector<1x1xf32>,
    } else {
    }
    %c0 = arith.constant 0 : index
    %c0_1 = arith.constant 0 : index
    %3 = vector.load %arg3[%c0, %c0_1] : memref<8x32xf32, #tpu.memory_space<vmem>>, vector<8x32xf32>
    %4 = arith.mulf %3, %3 : vector<8x32xf32>
    %cst = arith.constant dense<0.000000e+00> : vector<8xf32>
    %5 = vector.multi_reduction <add>, %4, %cst [1] : vector<8x32xf32> to vector<8xf32>
    %6 = vector.shape_cast %5 : vector<8xf32> to vector<8x1xf32>
    %cst_2 = arith.constant 1.000000e-24 : f32
    %7 = vector.broadcast %cst_2 : f32 to vector<8x1xf32>
    %8 = arith.maximumf %6, %7 : vector<8x1xf32>
    %9 = math.rsqrt %8 : vector<8x1xf32>
    %10 = vector.broadcast %9 : vector<8x1xf32> to vector<8x32xf32>
    %11 = arith.mulf %3, %10 : vector<8x32xf32>
    %12 = arith.truncf %11 : vector<8x32xf32> to vector<8x32xbf16>
    %c0_3 = arith.constant 0 : index
    %c0_4 = arith.constant 0 : index
    %13 = vector.load %arg6[%c0_3, %c0_4] : memref<8x32xbf16, #tpu.memory_space<vmem>>, vector<8x32xbf16>
    %cst_5 = arith.constant dense<0.000000e+00> : vector<8x8xf32>
    %14 = tpu.matmul %13, %12, %cst_5 {dimension_numbers = #tpu.dot_dimension_numbers<[1], [1], [0], [0], [0, 0, 1, 0], [], []>} : vector<8x32xbf16>, vector<8x32xbf16>, vector<8x8xf32> -> vector<8x8xf32>
    %c8_i32 = arith.constant 8 : i32
    %15 = arith.muli %arg0, %c8_i32 : i32
    %c8_i32_6 = arith.constant 8 : i32
    %16 = arith.subi %c8_i32_6, %15 : i32
    %c8_i32_7 = arith.constant 8 : i32
    %17 = arith.muli %arg1, %c8_i32_7 : i32
    %c8_i32_8 = arith.constant 8 : i32
    %18 = arith.subi %c8_i32_8, %17 : i32
    %19 = tpu.iota {dimensions = array<i32: 0>} : vector<8x1xi32>
    %20 = vector.broadcast %16 : i32 to vector<8x1xi32>
    %21 = arith.cmpi slt, %19, %20 : vector<8x1xi32>
    %22 = tpu.iota {dimensions = array<i32: 1>} : vector<1x8xi32>
    %23 = vector.broadcast %18 : i32 to vector<1x8xi32>
    %24 = arith.cmpi slt, %22, %23 : vector<1x8xi32>
    %cst_9 = arith.constant 0xFF800000 : f32
    %25 = vector.shape_cast %21 : vector<8x1xi1> to vector<8x1xi1>
    %26 = vector.broadcast %25 : vector<8x1xi1> to vector<8x8xi1>
    %27 = vector.broadcast %cst_9 : f32 to vector<8x8xf32>
    %28 = arith.select %26, %14, %27 : vector<8x8xi1>, vector<8x8xf32>
    %cst_10 = arith.constant dense<0xFF800000> : vector<8xf32>
    %29 = vector.multi_reduction <maximumf>, %28, %cst_10 [0] : vector<8x8xf32> to vector<8xf32>
    %30 = vector.shape_cast %29 : vector<8xf32> to vector<1x8xf32>
    %31 = vector.broadcast %30 : vector<1x8xf32> to vector<8x8xf32>
    %32 = arith.subf %14, %31 : vector<8x8xf32>
    %33 = math.exp %32 : vector<8x8xf32>
    %cst_11 = arith.constant 0.000000e+00 : f32
    %34 = vector.shape_cast %21 : vector<8x1xi1> to vector<8x1xi1>
    %35 = vector.broadcast %34 : vector<8x1xi1> to vector<8x8xi1>
    %36 = vector.broadcast %cst_11 : f32 to vector<8x8xf32>
    %37 = arith.select %35, %33, %36 : vector<8x8xi1>, vector<8x8xf32>
    %cst_12 = arith.constant dense<0.000000e+00> : vector<8xf32>
    %38 = vector.multi_reduction <add>, %37, %cst_12 [0] : vector<8x8xf32> to vector<8xf32>
    %39 = vector.shape_cast %38 : vector<8xf32> to vector<1x8xf32>
    %40 = math.log %39 : vector<1x8xf32>
    %41 = arith.addf %30, %40 : vector<1x8xf32>
    %42 = vector.shape_cast %41 : vector<1x8xf32> to vector<1x1x8xf32>
    %c0_13 = arith.constant 0 : index
    %c0_14 = arith.constant 0 : index
    %c0_15 = arith.constant 0 : index
    %43 = vector.load %arg4[%c0_13, %c0_14, %c0_15] : memref<1x1x8xf32, #tpu.memory_space<vmem>>, vector<1x1x8xf32>
    tpu.vector_store %arg4[%c0_13, %c0_14, %c0_15], %42 {strides = array<i32>} : memref<1x1x8xf32, #tpu.memory_space<vmem>>, vector<1x1x8xf32>,
    %cst_16 = arith.constant 0xFF800000 : f32
    %44 = vector.shape_cast %24 : vector<1x8xi1> to vector<1x8xi1>
    %45 = vector.broadcast %44 : vector<1x8xi1> to vector<8x8xi1>
    %46 = vector.broadcast %cst_16 : f32 to vector<8x8xf32>
    %47 = arith.select %45, %14, %46 : vector<8x8xi1>, vector<8x8xf32>
    %c0_17 = arith.constant 0 : index
    %c0_18 = arith.constant 0 : index
    %48 = vector.load %arg7[%c0_17, %c0_18] : memref<8x1xf32, #tpu.memory_space<vmem>>, vector<8x1xf32>
    %cst_19 = arith.constant dense<0xFF800000> : vector<8xf32>
    %49 = vector.multi_reduction <maximumf>, %47, %cst_19 [1] : vector<8x8xf32> to vector<8xf32>
    %50 = vector.shape_cast %49 : vector<8xf32> to vector<8x1xf32>
    %51 = arith.maximumf %48, %50 : vector<8x1xf32>
    %52 = vector.broadcast %51 : vector<8x1xf32> to vector<8x8xf32>
    %53 = arith.subf %14, %52 : vector<8x8xf32>
    %54 = math.exp %53 : vector<8x8xf32>
    %cst_20 = arith.constant 0.000000e+00 : f32
    %55 = vector.shape_cast %24 : vector<1x8xi1> to vector<1x8xi1>
    %56 = vector.broadcast %55 : vector<1x8xi1> to vector<8x8xi1>
    %57 = vector.broadcast %cst_20 : f32 to vector<8x8xf32>
    %58 = arith.select %56, %54, %57 : vector<8x8xi1>, vector<8x8xf32>
    %c0_21 = arith.constant 0 : index
    %c0_22 = arith.constant 0 : index
    %59 = vector.load %arg8[%c0_21, %c0_22] : memref<8x1xf32, #tpu.memory_space<vmem>>, vector<8x1xf32>
    %60 = arith.subf %48, %51 : vector<8x1xf32>
    %61 = math.exp %60 : vector<8x1xf32>
    %62 = arith.mulf %59, %61 : vector<8x1xf32>
    %cst_23 = arith.constant dense<0.000000e+00> : vector<8xf32>
    %63 = vector.multi_reduction <add>, %58, %cst_23 [1] : vector<8x8xf32> to vector<8xf32>
    %64 = vector.shape_cast %63 : vector<8xf32> to vector<8x1xf32>
    %65 = arith.addf %62, %64 : vector<8x1xf32>
    %c0_24 = arith.constant 0 : index
    %c0_25 = arith.constant 0 : index
    %66 = vector.load %arg8[%c0_24, %c0_25] : memref<8x1xf32, #tpu.memory_space<vmem>>, vector<8x1xf32>
    tpu.vector_store %arg8[%c0_24, %c0_25], %65 {strides = array<i32>} : memref<8x1xf32, #tpu.memory_space<vmem>>, vector<8x1xf32>,
    %c0_26 = arith.constant 0 : index
    %c0_27 = arith.constant 0 : index
    %67 = vector.load %arg7[%c0_26, %c0_27] : memref<8x1xf32, #tpu.memory_space<vmem>>, vector<8x1xf32>
    tpu.vector_store %arg7[%c0_26, %c0_27], %51 {strides = array<i32>} : memref<8x1xf32, #tpu.memory_space<vmem>>, vector<8x1xf32>,
    %68 = arith.cmpi eq, %arg0, %arg1 : i32
    %69 = arith.extui %68 : i1 to i32
    %c0_i32_28 = arith.constant 0 : i32
    %70 = arith.cmpi ne, %69, %c0_i32_28 : i32
    scf.if %70 {
      %74 = tpu.iota {dimensions = array<i32: 0>} : vector<8x8xi32>
      %75 = tpu.iota {dimensions = array<i32: 1>} : vector<8x8xi32>
      %76 = arith.cmpi eq, %74, %75 : vector<8x8xi32>
      %77 = vector.broadcast %16 : i32 to vector<8x8xi32>
      %78 = arith.cmpi slt, %74, %77 : vector<8x8xi32>
      %79 = arith.andi %76, %78 : vector<8x8xi1>
      %cst_31 = arith.constant 0.000000e+00 : f32
      %80 = vector.broadcast %cst_31 : f32 to vector<8x8xf32>
      %81 = arith.select %79, %14, %80 : vector<8x8xi1>, vector<8x8xf32>
      %82 = vector.shape_cast %81 : vector<8x8xf32> to vector<1x8x8xf32>
      %cst_32 = arith.constant dense<0.000000e+00> : vector<1xf32>
      %83 = vector.multi_reduction <add>, %82, %cst_32 [1, 2] : vector<1x8x8xf32> to vector<1xf32>
      %84 = vector.shape_cast %83 : vector<1xf32> to vector<1x1x1xf32>
      %85 = vector.extract %84[0, 0, 0] : f32 from vector<1x1x1xf32>
      %86 = vector.broadcast %85 : f32 to vector<1x1xf32>
      %c0_33 = arith.constant 0 : index
      %c0_34 = arith.constant 0 : index
      %87 = vector.load %arg9[%c0_33, %c0_34] : memref<1x1xf32, #tpu.memory_space<vmem>>, vector<1x1xf32>
      tpu.vector_store %arg9[%c0_33, %c0_34], %86 {strides = array<i32>} : memref<1x1xf32, #tpu.memory_space<vmem>>, vector<1x1xf32>,
    } else {
    }
    %c0_i32_29 = arith.constant 0 : i32
    %71 = arith.cmpi eq, %arg1, %c0_i32_29 : i32
    %72 = arith.extui %71 : i1 to i32
    %c0_i32_30 = arith.constant 0 : i32
    %73 = arith.cmpi ne, %72, %c0_i32_30 : i32
    scf.if %73 {
      %c0_31 = arith.constant 0 : index
      %c0_32 = arith.constant 0 : index
      %74 = vector.load %arg7[%c0_31, %c0_32] : memref<8x1xf32, #tpu.memory_space<vmem>>, vector<8x1xf32>
      %c0_33 = arith.constant 0 : index
      %c0_34 = arith.constant 0 : index
      %75 = vector.load %arg8[%c0_33, %c0_34] : memref<8x1xf32, #tpu.memory_space<vmem>>, vector<8x1xf32>
      %76 = math.log %75 : vector<8x1xf32>
      %77 = arith.addf %74, %76 : vector<8x1xf32>
      %cst_35 = arith.constant 0.000000e+00 : f32
      %78 = vector.broadcast %cst_35 : f32 to vector<8x1xf32>
      %79 = arith.select %21, %77, %78 : vector<8x1xi1>, vector<8x1xf32>
      %80 = vector.shape_cast %79 : vector<8x1xf32> to vector<1x8x1xf32>
      %cst_36 = arith.constant dense<0.000000e+00> : vector<1xf32>
      %81 = vector.multi_reduction <add>, %80, %cst_36 [1, 2] : vector<1x8x1xf32> to vector<1xf32>
      %82 = vector.shape_cast %81 : vector<1xf32> to vector<1x1x1xf32>
      %83 = vector.extract %82[0, 0, 0] : f32 from vector<1x1x1xf32>
      %84 = vector.broadcast %83 : f32 to vector<1x1xf32>
      %c0_37 = arith.constant 0 : index
      %c0_38 = arith.constant 0 : index
      %85 = vector.load %arg9[%c0_37, %c0_38] : memref<1x1xf32, #tpu.memory_space<vmem>>, vector<1x1xf32>
      %cst_39 = arith.constant 2.000000e+00 : f32
      %86 = vector.broadcast %cst_39 : f32 to vector<1x1xf32>
      %87 = arith.mulf %86, %85 : vector<1x1xf32>
      %88 = arith.subf %84, %87 : vector<1x1xf32>
      %89 = vector.shape_cast %88 : vector<1x1xf32> to vector<1x1x1xf32>
      %c0_40 = arith.constant 0 : index
      %c0_41 = arith.constant 0 : index
      %c0_42 = arith.constant 0 : index
      %90 = vector.load %arg5[%c0_40, %c0_41, %c0_42] : memref<1x1x1xf32, #tpu.memory_space<vmem>>, vector<1x1x1xf32>
      tpu.vector_store %arg5[%c0_40, %c0_41, %c0_42], %89 {strides = array<i32>} : memref<1x1x1xf32, #tpu.memory_space<vmem>>, vector<1x1x1xf32>,
    } else {
    }
    return
  }
  func.func @transform_0(%arg0: i32, %arg1: i32) -> (i32, i32) {
    %c0_i32 = arith.constant 0 : i32
    %c0_i32_0 = arith.constant 0 : i32
    return %arg0, %c0_i32 : i32, i32
  }
  func.func @transform_1(%arg0: i32, %arg1: i32) -> (i32, i32) {
    %c0_i32 = arith.constant 0 : i32
    %c0_i32_0 = arith.constant 0 : i32
    return %arg1, %c0_i32 : i32, i32
  }
  func.func @transform_2(%arg0: i32, %arg1: i32) -> (i32, i32, i32) {
    %c0_i32 = arith.constant 0 : i32
    %c0_i32_0 = arith.constant 0 : i32
    return %arg0, %c0_i32, %arg1 : i32, i32, i32
  }
  func.func @transform_3(%arg0: i32, %arg1: i32) -> (i32, i32, i32) {
    %c0_i32 = arith.constant 0 : i32
    %c0_i32_0 = arith.constant 0 : i32
    %c0_i32_1 = arith.constant 0 : i32
    return %arg0, %c0_i32, %c0_i32_0 : i32, i32, i32
  }
}

</mosaic_0001>

<bundles_post_ra>
// kernel: tpu_custom_call.1
= control target key start
LH: loop header
LB: loop body
LE: loop exit
PB: predicated region body
PF: predicated region fallthrough
CT: control target
= control target key end

     0   :  { %9 = vsyncpa [#allocation7], 0  ;;  %s494_s0 = inlined_call_operand.hbm [shape: f32[8,32], index: 0, kind: input, shape index: {}]   ;;  %s495_s1 = inlined_call_operand.hbm [shape: f32[8,32], index: 1, kind: input, shape index: {}]   ;;  %s496_s2 = inlined_call_operand.hbm [shape: f32[1,1,8], index: 2, kind: output, shape index: {0}]   ;;  %s497_s3 = inlined_call_operand.hbm [shape: f32[1,1,1], index: 3, kind: output, shape index: {1}]  }
   0x1   :  { %10 = vsyncpa [#allocation10], 0 }
   0x2   :  { %11 = vsyncpa [#allocation8], 0 }
   0x3   :  { %12 = vsyncpa [#allocation13], 0  ;;  %s395_s12 = smov [#allocation6]   ;;  %s396_s14 = smov [#allocation9]  }
   0x4   :  { %s19_s13 = sshll.u32 %s395_s12, 4  ;;  %s29_s15 = sshll.u32 %s396_s14, 4  ;;  %s20_s13 = int_to_ptr.vmem [resolvable:$true] %s19_s13  ;;  %s30_s15 = int_to_ptr.vmem [resolvable:$true] %s29_s15 }
   0x5   :  { %s299_s18 = scalar_lea.hbm %s494_s0, 128 }
   0x6   :  { %p300_p0 = scmp.ne.s32.totalorder %s494_s0, %s299_s18  ;;  %p303_p1 = scmp.lt.u32.totalorder %s299_s18, %s494_s0 }
   0x8   :  { %p305_p2 = pnand %p303_p1, %p300_p0 }
   0xa   :  { %308 = shalt.err (!%p305_p2)
}
   0xb   :  { %s309_s23 = scalar_lea.vmem %s20_s13, 128  ;;  %p314_p4 = scmp.lt.s32.totalorder %s20_s13, %s20_s13 }
   0xc   :  { %p310_p3 = scmp.ne.s32.totalorder %s20_s13, %s309_s23  ;;  %p315_p5 = scmp.lt.s32.totalorder %s309_s23, %s309_s23 }
   0xe   :  { %p316_p6 = por %p315_p5, %p314_p4 }
  0x10   :  { %p317_p7 = pnand %p316_p6, %p310_p3 }
  0x12   :  { %320 = shalt.err (!%p317_p7)
}
  0x13   :  { %22 = dma.hbm_to_vmem [thread:$0]  %s494_s0, 128, %s20_s13, [#allocation7]  }
  0x14   :  { %s321_s28 = scalar_lea.hbm %s495_s1, 128 }
  0x15   :  { %p322_p8 = scmp.ne.s32.totalorder %s495_s1, %s321_s28  ;;  %p325_p9 = scmp.lt.u32.totalorder %s321_s28, %s495_s1 }
  0x17   :  { %p327_p10 = pnand %p325_p9, %p322_p8 }
  0x19   :  { %330 = shalt.err (!%p327_p10)
}
  0x1a   :  { %s331_s6 = scalar_lea.vmem %s30_s15, 128  ;;  %p336_p12 = scmp.lt.s32.totalorder %s30_s15, %s30_s15 }
  0x1b   :  { %p332_p11 = scmp.ne.s32.totalorder %s30_s15, %s331_s6  ;;  %p337_p13 = scmp.lt.s32.totalorder %s331_s6, %s331_s6 }
  0x1d   :  { %p338_p0 = por %p337_p13, %p336_p12 }
  0x1f   :  { %p339_p1 = pnand %p338_p0, %p332_p11 }
  0x21   :  { %342 = shalt.err (!%p339_p1)
}
  0x22   :  { %32 = dma.hbm_to_vmem [thread:$0]  %s495_s1, 128, %s30_s15, [#allocation10]  }
  0x23   :  { %387 = dma.done.wait [#allocation7], 128  }
  0x24   :  { %388 = vsyncadd [#allocation7], 4294967168 }
  0x25   :  { %389 = dma.done.wait [#allocation10], 128  }
  0x26   :  { %390 = vsyncadd [#allocation10], 4294967168  ;;  %v44_v0 = vld [vmem:[#allocation6] sm:$0xff]  ;;  %vm46_vm0 = vcmask 261120   ;;  %v62_v1 = vld [vmem:[#allocation9] sm:$0xff]  ;;  %vm57_vm1 = vcmask 7168   ;;  %v123_v20 = vlaneseq }
  0x27   :  { %v45_v2 = vmul.f32 %v44_v0, %v44_v0  ;;  %v63_v3 = vmul.f32 %v62_v1, %v62_v1  ;;  %v397_v6 = vmov 0.0   ;;  %vm398_vm2 = vmmov 0   ;;  %s401_s8 = smov [#allocation11]  }
  0x28   :  { %59 = vst.msk [vmem:[#allocation4] sm:$0xff] %vm57_vm1, %v397_v6  ;;  %265 = vmatprep.subr.bf16.mxu0 %v397_v6  ;;  %267 = vmatprep.mubr.msk.bf16.mxu0 %vm398_vm2, %v397_v6  ;;  %vm55_vm3 = vcmask 257024   ;;  %v128_v21 = vand.u32 127, %v123_v20  ;;  %v124_v22 = vshrl.u32 %v123_v20, 7  ;;  %v399_v23 = vmov -inf   ;;  %s238_s9 = sshll.u32 %s401_s8, 4  ;;  %s239_s9 = int_to_ptr.vmem [resolvable:$true] %s238_s9 }
  0x29   :  { %v47_v4 = vsel %vm46_vm0, %v45_v2, 0.0  ;;  %v65_v5 = vsel %vm46_vm0, %v63_v3, 0.0  ;;  %58 = vst.msk [vmem:[#allocation3] sm:$0xff] %vm57_vm1, %v399_v23  ;;  %vm134_vm6 = vcmask 64512   ;;  %v400_v40 = vmov 0   ;;  %s343_s10 = scalar_lea.vmem %s239_s9, 16  ;;  %p348_p3 = scmp.lt.s32.totalorder %s239_s9, %s239_s9 }
  0x2a   :  { %48 = vadd.xlane.f32.xlu0 %v47_v4  ;;  %vm191_vm4 = vcmp.eq.s32.totalorder %v124_v22, %v128_v21  ;;  %vm130_vm5 = vcmp.lt.s32.totalorder %v128_v21, 8  ;;  %283 = vset.pattern.permute.xlu1 %v400_v40  ;;  %vm156_vm7 = vcmask 57344   ;;  %vm60_vm8 = vcmask 0   ;;  %p344_p2 = scmp.ne.s32.totalorder %s239_s9, %s343_s10  ;;  %s347_s11 = scalar_lea.vmem %s239_s9, 32 }
  0x2b   :  { %284 = vset.pattern.permute.xlu0 %v400_v40  ;;  %61 = vst.msk [vmem:[#allocation5] sm:$0x1] %vm60_vm8, %v397_v6  ;;  %p349_p4 = scmp.lt.s32.totalorder %s347_s11, %s343_s10 }
  0x2d   :  { %p350_p5 = por %p349_p4, %p348_p3 }
  0x2e   :  { %66 = vadd.xlane.f32.xlu0 %v65_v5 }
  0x2f   :  { %p351_p6 = pnand %p350_p5, %p344_p2 }
  0x30   :  { %v161_v52 = vld [vmem:[#allocation3] sm:$0xff] }
  0xb7   :  { %v49_v7 = vpop.xlane.xlu0 %48 }
  0xb8   :  { %v50_v8 = vmax.f32 %v49_v7, 1e-24 }
  0xba   :  { %285 = vrsqrt.f32 %v50_v8 }
  0xbb   :  { %v67_v9 = vpop.xlane.xlu0 %66 }
  0xbc   :  { %v68_v10 = vmax.f32 %v67_v9, 1e-24 }
  0xbe   :  { %287 = vrsqrt.f32 %v68_v10 }
  0xc4   :  { %v286_v11 = vpop.eup %285 }
  0xc5   :  { %v52_v12 = vmul.f32 100.0, %v286_v11 }
  0xc7   :  { %v53_v13 = vmul.f32 %v52_v12, %v44_v0 }
  0xc8   :  { %v288_v14 = vpop.eup %287 }
  0xc9   :  { %v54_v15 = vpack.c.bf16 %v53_v13, %v53_v13  ;;  %v70_v16 = vmul.f32 %v288_v14, %v62_v1  ;;  %v175_v1 = vld [vmem:[#allocation4] sm:$0xff] }
  0xcb   :  { %56 = vst.msk [vmem:[#allocation2] sm:$0xf] %vm55_vm3, %v54_v15  ;;  %v71_v17 = vpack.c.bf16 %v70_v16, %v70_v16 }
  0xcd   :  { %v77_v18 = vsel %vm46_vm0, %v71_v17, 0 }
  0xce   :  { %266 = vmatpush3.bf16.xpose.msra.mxu0 %v77_v18 }
  0xd2   :  { %v72_v19 = vld [vmem:[#allocation2] sm:$0xf] }
  0xd5   :  { %268 = vmatmul.mubr.msk.bf16.vlgmr.msra.gmra.mrb[0].mxu0 %vm46_vm0, %v72_v19 }
 0x1a8   :  { %v113_v24 = vpop.f32.mrb[0].mxu0 }
 0x1a9   :  { %v269_v25 = vpop.f32.mrb[1].mxu0  ;;  %v160_v26 = vsel %vm130_vm5, %v113_v24, -inf  ;;  %v135_v27 = vsel %vm134_vm6, %v113_v24, -inf  ;;  %v193_v28 = vsel %vm191_vm4, %v113_v24, 0.0 }
 0x1aa   :  { %v116_v29 = vpop.f32.mrb[2].mxu0  ;;  %v162_v30 = vsel %vm134_vm6, %v160_v26, -inf  ;;  %v136_v31 = vrot.slane %v135_v27, 4  ;;  %v194_v62 = vsel %vm134_vm6, %v193_v28, 0.0 }
 0x1ab   :  { %163 = vmax.xlane.f32.xlu1 %v162_v30  ;;  %v270_v32 = vpop.f32.mrb[3].mxu0 }
 0x1ac   :  { %v137_v33 = vmax.f32 %v135_v27, %v136_v31 }
 0x1ae   :  { %v138_v34 = vrot.slane %v137_v33, 2 }
 0x1b0   :  { %v139_v35 = vmax.f32 %v137_v33, %v138_v34 }
 0x1b2   :  { %v140_v36 = vrot.slane %v139_v35, 1 }
 0x1b4   :  { %v141_v37 = vmax.f32 %v139_v35, %v140_v36 }
 0x1b6   :  { %v142_v38 = vsub.f32 %v113_v24, %v141_v37 }
 0x1b8   :  { %v143_v39 = vmul.f32 1.442695, %v142_v38 }
 0x1ba   :  { %289 = vpow2.f32 %v143_v39 }
 0x1c4   :  { %v290_v41 = vpop.eup %289 }
 0x1c5   :  { %v146_v42 = vsel %vm134_vm6, %v290_v41, 0.0 }
 0x1c6   :  { %v147_v43 = vrot.slane %v146_v42, 4 }
 0x1c8   :  { %v148_v44 = vadd.f32 %v147_v43, %v146_v42 }
 0x1ca   :  { %v149_v45 = vrot.slane %v148_v44, 2 }
 0x1cc   :  { %v150_v46 = vadd.f32 %v149_v45, %v148_v44 }
 0x1ce   :  { %v151_v47 = vrot.slane %v150_v46, 1 }
 0x1d0   :  { %v152_v48 = vadd.f32 %v151_v47, %v150_v46 }
 0x1d2   :  { %291 = vlog2.f32 %v152_v48 }
 0x1dc   :  { %v292_v49 = vpop.eup %291 }
 0x1dd   :  { %v154_v50 = vmul.f32 0.6931472, %v292_v49 }
 0x1df   :  { %v155_v51 = vadd.f32 %v154_v50, %v141_v37 }
 0x1e1   :  { %157 = vst.msk [vmem:[#allocation11] sm:$0x1] %vm156_vm7, %v155_v51 }
 0x238   :  { %v164_v53 = vpop.xlane.xlu1 %163 }
 0x239   :  { %v165_v54 = vmax.f32 %v161_v52, %v164_v53 }
 0x23b   :  { %v176_v55 = vsub.f32 %v161_v52, %v165_v54  ;;  %186 = vst.msk [vmem:[#allocation3] sm:$0xff] %vm57_vm1, %v165_v54  ;;  %168 = vperm.xlu1 %283, %v165_v54  }
 0x23d   :  { %v177_v63 = vmul.f32 1.442695, %v176_v55 }
 0x242   :  { %v210_v15 = vld [vmem:[#allocation3] sm:$0xff] }
 0x2ba   :  { %v169_v56 = vpop.permute.xlu1 %168 }
 0x2bb   :  { %v171_v57 = vsub.f32 %v113_v24, %v169_v56 }
 0x2bd   :  { %v172_v58 = vmul.f32 1.442695, %v171_v57 }
 0x2bf   :  { %293 = vpow2.f32 %v172_v58 }
 0x2c0   :  { %295 = vpow2.f32 %v177_v63 }
 0x2c9   :  { %v294_v59 = vpop.eup %293 }
 0x2ca   :  { %v174_v60 = vsel %vm130_vm5, %v294_v59, 0.0  ;;  %v296_v0 = vpop.eup %295 }
 0x2cb   :  { %v180_v61 = vsel %vm134_vm6, %v174_v60, 0.0  ;;  %v179_v2 = vmul.f32 %v296_v0, %v175_v1 }
 0x2cc   :  { %181 = vadd.xlane.f32.xlu0 %v180_v61 }
 0x2d0   :  { %195 = vadd.xlane.f32.xlu0 %v194_v62 }
 0x359   :  { %v182_v3 = vpop.xlane.xlu0 %181 }
 0x35a   :  { %v183_v4 = vadd.f32 %v182_v3, %v179_v2 }
 0x35c   :  { %185 = vst.msk [vmem:[#allocation4] sm:$0xff] %vm57_vm1, %v183_v4 }
 0x35d   :  { %v196_v5 = vpop.xlane.xlu0 %195 }
 0x35e   :  { %v197_v7 = vrot.slane %v196_v5, 4 }
 0x360   :  { %v198_v8 = vadd.f32 %v197_v7, %v196_v5 }
 0x362   :  { %v199_v9 = vrot.slane %v198_v8, 2 }
 0x363   :  { %v211_v10 = vld [vmem:[#allocation4] sm:$0xff] }
 0x364   :  { %v200_v11 = vadd.f32 %v199_v9, %v198_v8  ;;  %297 = vlog2.f32 %v211_v10 }
 0x366   :  { %v201_v12 = vrot.slane %v200_v11, 1 }
 0x368   :  { %v202_v13 = vadd.f32 %v201_v12, %v200_v11 }
 0x36a   :  { %271 = vpush %v202_v13 }
 0x36e   :  { %v298_v6 = vpop.eup %297 }
 0x36f   :  { %v213_v14 = vmul.f32 0.6931472, %v298_v6 }
 0x371   :  { %v214_v16 = vadd.f32 %v213_v14, %v210_v15 }
 0x373   :  { %v216_v17 = vsel %vm57_vm1, %v214_v16, 0.0 }
 0x374   :  { %217 = vadd.xlane.f32.xlu0 %v216_v17 }
 0x39b   :  { %s272_s1 = spop %271 }
 0x39c   :  { %v204_v18 = vstv %s272_s1 }
 0x39d   :  { %206 = vst.msk [vmem:[#allocation5] sm:$0x1] %vm60_vm8, %v204_v18 }
 0x39e   :  { %354 = shalt.err (!%p351_p6)
}
 0x39f   :  { %s355_s14 = scalar_lea.hbm %s496_s2, 16 }
 0x3a0   :  { %p356_p7 = scmp.ne.s32.totalorder %s496_s2, %s355_s14  ;;  %p359_p8 = scmp.lt.u32.totalorder %s355_s14, %s496_s2 }
 0x3a2   :  { %p361_p9 = pnand %p359_p8, %p356_p7 }
 0x3a4   :  { %364 = shalt.err (!%p361_p9)
}
 0x3a5   :  { %241 = dma.vmem_to_hbm [thread:$0]  %s239_s9, 16, %s496_s2, [#allocation8]   ;;  %v227_v26 = vld [vmem:[#allocation5] sm:$0x1] }
 0x3a6   :  { %s402_s21 = smov [#allocation12]   ;;  %v228_v27 = vmul.f32 2.0, %v227_v26 }
 0x3a7   :  { %s248_s22 = sshll.u32 %s402_s21, 4  ;;  %s249_s22 = int_to_ptr.vmem [resolvable:$true] %s248_s22 }
 0x3a8   :  { %s365_s24 = scalar_lea.vmem %s249_s22, 16  ;;  %s369_s2 = scalar_lea.vmem %s249_s22, 32 }
 0x3a9   :  { %p366_p10 = scmp.ne.s32.totalorder %s249_s22, %s365_s24  ;;  %p370_p11 = scmp.lt.s32.totalorder %s249_s22, %s249_s22 }
 0x3aa   :  { %p371_p12 = scmp.lt.s32.totalorder %s369_s2, %s365_s24 }
 0x3ac   :  { %p372_p13 = por %p371_p12, %p370_p11 }
 0x3ae   :  { %p373_p0 = pnand %p372_p13, %p366_p10 }
 0x401   :  { %v218_v19 = vpop.xlane.xlu0 %217 }
 0x402   :  { %v219_v20 = vrot.slane %v218_v19, 4 }
 0x404   :  { %v220_v21 = vadd.f32 %v219_v20, %v218_v19 }
 0x406   :  { %v221_v22 = vrot.slane %v220_v21, 2 }
 0x408   :  { %v222_v23 = vadd.f32 %v221_v22, %v220_v21 }
 0x40a   :  { %v223_v24 = vrot.slane %v222_v23, 1 }
 0x40c   :  { %v224_v25 = vadd.f32 %v223_v24, %v222_v23 }
 0x40e   :  { %273 = vpush %v224_v25 }
 0x43f   :  { %s274_s23 = spop %273 }
 0x440   :  { %v226_v28 = vstv %s274_s23 }
 0x441   :  { %v229_v29 = vsub.f32 %v226_v28, %v228_v27 }
 0x443   :  { %231 = vst.msk [vmem:[#allocation12] sm:$0x1] %vm60_vm8, %v229_v29 }
 0x444   :  { %376 = shalt.err (!%p373_p0)
}
 0x445   :  { %s377_s27 = scalar_lea.hbm %s497_s3, 16 }
 0x446   :  { %p378_p1 = scmp.ne.s32.totalorder %s497_s3, %s377_s27  ;;  %p381_p2 = scmp.lt.u32.totalorder %s377_s27, %s497_s3 }
 0x448   :  { %p383_p3 = pnand %p381_p2, %p378_p1 }
 0x44a   :  { %386 = shalt.err (!%p383_p3)
}
 0x44b   :  { %251 = dma.vmem_to_hbm [thread:$0]  %s249_s22, 16, %s497_s3, [#allocation13]  }
 0x44c   :  { %391 = dma.done.wait [#allocation8], 16  }
 0x44d   :  { %392 = vsyncadd [#allocation8], 4294967280 }
 0x44e   :  { %393 = dma.done.wait [#allocation13], 16  }
 0x44f   :  { %394 = vsyncadd [#allocation13], 4294967280 }
 0x450   :  { %258 = vsyncpa [#allocation7], 1 }
 0x451   :  { %259 = vsyncpa [#allocation10], 1 }
 0x452   :  { %260 = vsyncpa [#allocation8], 1 }
 0x453   :  { %261 = vsyncpa [#allocation13], 1 }

</bundles_post_ra>
